<compile_context>
chip_gen: v7x
topology: tpu7x:2x2x1
jax: 0.10.0
libtpu: 0.0.40
codegen_flags: <defaults>
</compile_context>

<pallas_src>
import math
import functools

import jax
import jax.numpy as jnp
from jax import lax
from jax.experimental import pallas as pl
from jax.experimental.pallas import tpu as pltpu


def _vmem_limit_bytes():
    # ~75% of physical VMEM: ~96 MiB on v5e/v6e (128 MiB), ~48 MiB on v7x (64 MiB).
    try:
        cap = int(pltpu.get_tpu_info().vmem_capacity_bytes)
        return max(32 * 1024 * 1024, (cap * 3) // 4)
    except Exception:
        return 48 * 1024 * 1024


def _layernorm(v, alpha, bias, eps=1e-6):
    # torch custom LN: alpha * (x - mean) / (std + eps) + bias, unbiased std (ddof=1).
    d = v.shape[-1]
    mean = jnp.mean(v, axis=-1, keepdims=True)
    var = jnp.sum((v - mean) ** 2, axis=-1, keepdims=True) / (d - 1)
    std = jnp.sqrt(var)
    return alpha * (v - mean) / (std + eps) + bias


# ---------------------------------------------------------------------------
# Kernel 1: LN1 + fused QKV projection -> head-major (B, H, S, d_k) bf16.
# ---------------------------------------------------------------------------
def qkv_proj_kernel(x_ref, ln1a_ref, ln1b_ref, wqkv_ref, bqkv_ref,
                    q_ref, k_ref, v_ref, *, num_heads):
    H = num_heads
    D = x_ref.shape[2]
    d_k = D // H

    x = x_ref[0].astype(jnp.float32)                       # (TQ, D)
    ln = _layernorm(x, ln1a_ref[...], ln1b_ref[...]).astype(jnp.bfloat16)
    # One full-depth matmul for q/k/v together (N = 3D). Scale already folded
    # into the q columns of wqkv/bqkv on host.
    qkv = jnp.dot(ln, wqkv_ref[...], preferred_element_type=jnp.float32) + bqkv_ref[...]
    qkv = qkv.astype(jnp.bfloat16)                          # (TQ, 3D), cast once

    # Scatter to head-major outputs; H small stores per tensor, once per q tile
    # (keeps all per-KV-step work in kernel 2 slice-free).
    for h in range(H):
        lo = h * d_k
        q_ref[0, h] = qkv[:, lo:lo + d_k]
        k_ref[0, h] = qkv[:, D + lo:D + lo + d_k]
        v_ref[0, h] = qkv[:, 2 * D + lo:2 * D + lo + d_k]


# ---------------------------------------------------------------------------
# Kernel 2: per-head flash attention (online softmax over KV tiles).
# Grid: (B, H, q_tiles, kv_tiles); heads are a parallel grid axis.
# ---------------------------------------------------------------------------
def flash_attn_kernel(q_ref, k_ref, v_ref, mask_ref, o_ref, m_ref, l_ref, acc_ref):
    ki = pl.program_id(3)
    nk = pl.num_programs(3)

    @pl.when(ki == 0)
    def _():
        m_ref[...] = jnp.full_like(m_ref, -jnp.inf)
        l_ref[...] = jnp.zeros_like(l_ref)
        acc_ref[...] = jnp.zeros_like(acc_ref)

    q = q_ref[0, 0]                        # (TQ, d_k) bf16, pre-scaled by 1/sqrt(d_k)
    k = k_ref[0, 0]                        # (TK, d_k) bf16
    v = v_ref[0, 0]                        # (TK, d_k) bf16

    # contraction on the last dim of both operands -> no explicit k transpose
    s = lax.dot_general(q, k, (((1,), (1,)), ((), ())),
                        preferred_element_type=jnp.float32)          # (TQ, TK)
    # masked_fill semantics (exactly matches reference, incl. fully-masked rows)
    # TODO(synk): mask tile is re-fetched per head (it does not depend on h);
    #             negligible vs k/v traffic for typical H, int8 keeps it 4x small.
    s = jnp.where(mask_ref[0] == 0, -1e9, s)

    m_prev = m_ref[...]                                               # (TQ, 1) f32
    m_new = jnp.maximum(m_prev, jnp.max(s, axis=-1, keepdims=True))
    alpha = jnp.exp(m_prev - m_new)
    # exp in bf16 (EUP bf16 path on v6e/v7x); PV matmul consumes bf16 directly.
    p = jnp.exp((s - m_new).astype(jnp.bfloat16))                     # (TQ, TK) bf16
    l_ref[...] = alpha * l_ref[...] + jnp.sum(p.astype(jnp.float32),
                                              axis=-1, keepdims=True)
    acc_ref[...] = alpha * acc_ref[...] + jnp.dot(
        p, v, preferred_element_type=jnp.float32)
    m_ref[...] = m_new

    @pl.when(ki == nk - 1)
    def _():
        inv_l = pl.reciprocal(l_ref[...], approx=True)   # approx=False if tighter acc needed
        o_ref[0, 0] = (acc_ref[...] * inv_l).astype(o_ref.dtype)


# ---------------------------------------------------------------------------
# Kernel 3: head concat (once per q tile) + wo projection (full K = D) +
#           residual + LN2 + FFN + residual.
# ---------------------------------------------------------------------------
def out_ffn_kernel(x_ref, attn_ref, wo_ref, bo_ref, ln2a_ref, ln2b_ref,
                   w1_ref, b1_ref, w2_ref, b2_ref, o_ref, *, num_heads):
    heads = attn_ref[0]                                     # (H, TQ, d_k) bf16
    # One concat/copy per q tile, then a single full-depth output projection.
    cat = jnp.concatenate([heads[h] for h in range(num_heads)], axis=-1)  # (TQ, D)
    attn_out = jnp.dot(cat, wo_ref[...], preferred_element_type=jnp.float32) + bo_ref[...]

    x1 = x_ref[0].astype(jnp.float32) + attn_out            # residual 1 (dropout = id)

    ln2 = _layernorm(x1, ln2a_ref[...], ln2b_ref[...]).astype(jnp.bfloat16)
    hid = jnp.dot(ln2, w1_ref[...], preferred_element_type=jnp.float32) + b1_ref[...]
    hid = jnp.maximum(hid, 0.0).astype(jnp.bfloat16)        # relu; inner dropout = id
    ff = jnp.dot(hid, w2_ref[...], preferred_element_type=jnp.float32) + b2_ref[...]

    o_ref[0] = (x1 + ff).astype(o_ref.dtype)                # residual 2


# ---------------------------------------------------------------------------
# Wrapper
# ---------------------------------------------------------------------------
def encoder_block(x, mask, params, num_heads, *, block_q=256, block_k=256):
    B, S, D = x.shape
    F = params["w1"].shape[1]
    H = num_heads
    assert D % H == 0
    d_k = D // H
    scale = 1.0 / math.sqrt(d_k)

    tq = min(block_q, S)
    tk = min(block_k, S)
    assert S % tq == 0 and S % tk == 0
    assert tq == S or tq % 8 == 0
    assert tk == S or tk % 128 == 0

    vmem_limit = _vmem_limit_bytes()
    bf16 = lambda a: a.astype(jnp.bfloat16)

    # Fused QKV weight (D, 3D); 1/sqrt(d_k) folded into the query columns (one-time prep).
    wqkv = jnp.concatenate(
        [params["wq"] * scale, params["wk"], params["wv"]], axis=1).astype(jnp.bfloat16)
    bqkv = jnp.concatenate(
        [params["bq"] * scale, params["bk"], params["bv"]], axis=1).astype(jnp.float32)
    wo, w1, w2 = bf16(params["wo"]), bf16(params["w1"]), bf16(params["w2"])
    mask_i8 = mask.astype(jnp.int8)                         # 4x less mask DMA

    # ---- kernel 1: LN1 + fused QKV -> head-major q/k/v ----
    full1 = lambda shape: pl.BlockSpec(shape, lambda b, s: (0,) * len(shape))
    qkv_shape = jax.ShapeDtypeStruct((B, H, S, d_k), jnp.bfloat16)
    q, k, v = pl.pallas_call(
        functools.partial(qkv_proj_kernel, num_heads=H),
        out_shape=(qkv_shape, qkv_shape, qkv_shape),
        grid_spec=pltpu.PrefetchScalarGridSpec(
            num_scalar_prefetch=0,
            grid=(B, S // tq),
            in_specs=[
                pl.BlockSpec((1, tq, D), lambda b, s: (b, s, 0)),   # x
                full1((1, D)), full1((1, D)),                       # ln1 alpha, bias
                full1((D, 3 * D)), full1((1, 3 * D)),               # wqkv, bqkv
            ],
            out_specs=[pl.BlockSpec((1, H, tq, d_k), lambda b, s: (b, 0, s, 0))] * 3,
        ),
        compiler_params=pltpu.CompilerParams(
            dimension_semantics=("parallel", "parallel"),
            vmem_limit_bytes=vmem_limit),
    )(x, params["ln1_a"], params["ln1_b"], wqkv, bqkv)

    # ---- kernel 2: per-head flash attention over (B, H, q_tiles, kv_tiles) ----
    attn = pl.pallas_call(
        flash_attn_kernel,
        out_shape=jax.ShapeDtypeStruct((B, H, S, d_k), jnp.bfloat16),
        grid_spec=pltpu.PrefetchScalarGridSpec(
            num_scalar_prefetch=0,
            grid=(B, H, S // tq, S // tk),
            in_specs=[
                pl.BlockSpec((1, 1, tq, d_k), lambda b, h, qi, ki: (b, h, qi, 0)),  # q
                pl.BlockSpec((1, 1, tk, d_k), lambda b, h, qi, ki: (b, h, ki, 0)),  # k
                pl.BlockSpec((1, 1, tk, d_k), lambda b, h, qi, ki: (b, h, ki, 0)),  # v
                pl.BlockSpec((1, tq, tk), lambda b, h, qi, ki: (b, qi, ki)),        # mask
            ],
            out_specs=pl.BlockSpec((1, 1, tq, d_k), lambda b, h, qi, ki: (b, h, qi, 0)),
            scratch_shapes=[
                pltpu.VMEM((tq, 1), jnp.float32),     # running max m
                pltpu.VMEM((tq, 1), jnp.float32),     # running denom l
                pltpu.VMEM((tq, d_k), jnp.float32),   # output accumulator
            ],
        ),
        compiler_params=pltpu.CompilerParams(
            dimension_semantics=("parallel", "parallel", "parallel", "arbitrary"),
            vmem_limit_bytes=vmem_limit),
    )(q, k, v, mask_i8)

    # ---- kernel 3: concat heads + wo + residual + LN2 + FFN + residual ----
    full3 = lambda shape: pl.BlockSpec(shape, lambda b, s: (0,) * len(shape))
    out = pl.pallas_call(
        functools.partial(out_ffn_kernel, num_heads=H),
        out_shape=jax.ShapeDtypeStruct((B, S, D), x.dtype),
        grid_spec=pltpu.PrefetchScalarGridSpec(
            num_scalar_prefetch=0,
            grid=(B, S // tq),
            in_specs=[
                pl.BlockSpec((1, tq, D), lambda b, s: (b, s, 0)),          # x (residual)
                pl.BlockSpec((1, H, tq, d_k), lambda b, s: (b, 0, s, 0)),  # attn (head-major)
                full3((D, D)), full3((1, D)),                              # wo, bo
                full3((1, D)), full3((1, D)),                              # ln2 alpha, bias
                full3((D, F)), full3((1, F)),                              # w1, b1
                full3((F, D)), full3((1, D)),                              # w2, b2
            ],
            out_specs=pl.BlockSpec((1, tq, D), lambda b, s: (b, s, 0)),
        ),
        compiler_params=pltpu.CompilerParams(
            dimension_semantics=("parallel", "parallel"),
            vmem_limit_bytes=vmem_limit),
    )(x, attn, wo, params["bo"], params["ln2_a"], params["ln2_b"],
      w1, params["b1"], w2, params["b2"])
    return out


# ---------------------------------------------------------------------------
# Pure-JAX f32 reference for verification.
# ---------------------------------------------------------------------------
def reference(x, mask, p, num_heads):
    B, S, D = x.shape
    d_k = D // num_heads

    def ln(v, a, b):
        mean = jnp.mean(v, -1, keepdims=True)
        std = jnp.sqrt(jnp.sum((v - mean) ** 2, -1, keepdims=True) / (D - 1))
        return a * (v - mean) / (std + 1e-6) + b

    l1 = ln(x, p["ln1_a"], p["ln1_b"])
    q = l1 @ p["wq"] + p["bq"]
    k = l1 @ p["wk"] + p["bk"]
    v = l1 @ p["wv"] + p["bv"]
    q = q.reshape(B, S, num_heads, d_k).transpose(0, 2, 1, 3)
    k = k.reshape(B, S, num_heads, d_k).transpose(0, 2, 1, 3)
    v = v.reshape(B, S, num_heads, d_k).transpose(0, 2, 1, 3)
    s = jnp.einsum("bhqd,bhkd->bhqk", q, k) / math.sqrt(d_k)
    s = jnp.where(mask[:, None, :, :] == 0, -1e9, s)
    a = jax.nn.softmax(s, axis=-1)
    o = jnp.einsum("bhqk,bhkd->bhqd", a, v).transpose(0, 2, 1, 3).reshape(B, S, D)
    x1 = x + (o @ p["wo"] + p["bo"])
    l2 = ln(x1, p["ln2_a"], p["ln2_b"])
    ff = jnp.maximum(l2 @ p["w1"] + p["b1"], 0.0) @ p["w2"] + p["b2"]
    return x1 + ff


if __name__ == "__main__":
    B, S, D, H, F = 2, 8, 32, 4, 64   # batch, seq, d_model, heads, d_ff

    key = jax.random.PRNGKey(0)
    ks = jax.random.split(key, 12)

    def w(k, shape, scl=0.1):
        return (scl * jax.random.normal(k, shape)).astype(jnp.float32)

    params = {
        "ln1_a": jnp.ones((1, D), jnp.float32),
        "ln1_b": jnp.zeros((1, D), jnp.float32),
        "wq": w(ks[0], (D, D)), "bq": w(ks[1], (1, D)),
        "wk": w(ks[2], (D, D)), "bk": w(ks[3], (1, D)),
        "wv": w(ks[4], (D, D)), "bv": w(ks[5], (1, D)),
        "wo": w(ks[6], (D, D)), "bo": w(ks[7], (1, D)),
        "ln2_a": jnp.ones((1, D), jnp.float32),
        "ln2_b": jnp.zeros((1, D), jnp.float32),
        "w1": w(ks[8], (D, F)), "b1": w(ks[9], (1, F)),
        "w2": w(ks[10], (F, D)), "b2": w(ks[11], (1, D)),
    }

    kx, km = jax.random.split(jax.random.PRNGKey(42))
    x = jax.random.normal(kx, (B, S, D), jnp.float32)
    # causal-ish mask to exercise the masking path (1 = attend)
    mask = jnp.tril(jnp.ones((S, S), jnp.int32))[None].repeat(B, axis=0)

    out = encoder_block(x, mask, params, num_heads=H)
    out = jax.block_until_ready(out)

    ref = reference(x, mask, params, num_heads=H)
    assert out.shape == (B, S, D)
    # bf16 matmul operands (f32 accumulation), bf16 exp + approx reciprocal
    # -> relaxed tolerance vs the f32 reference
    assert jnp.allclose(out, ref, atol=2e-2, rtol=2e-2), (
        f"max abs err {jnp.max(jnp.abs(out - ref))}"
    )
    print("KERNEL_OK")
</pallas_src>

<mosaic_0001>
module attributes {stable_mosaic.version = 11 : i64} {
  func.func @qkv_proj_kernel(%arg0: i32, %arg1: i32, %arg2: memref<1x8x32xf32, #tpu.memory_space<vmem>>, %arg3: memref<1x32xf32, #tpu.memory_space<vmem>>, %arg4: memref<1x32xf32, #tpu.memory_space<vmem>>, %arg5: memref<32x96xbf16, #tpu.memory_space<vmem>>, %arg6: memref<1x96xf32, #tpu.memory_space<vmem>>, %arg7: memref<1x4x8x8xbf16, #tpu.memory_space<vmem>>, %arg8: memref<1x4x8x8xbf16, #tpu.memory_space<vmem>>, %arg9: memref<1x4x8x8xbf16, #tpu.memory_space<vmem>>) attributes {dimension_semantics = [#tpu.dimension_semantics<parallel>, #tpu.dimension_semantics<parallel>], iteration_bounds = array<i64: 2, 1>, scalar_prefetch = 0 : i64, scratch_operands = 0 : i64, tpu.core_type = #tpu.core_type<tc>, window_params = [{transform_indices = @transform_0, window_bounds = array<i64: 1, 8, 32>}, {pipeline_mode = #tpu.pipeline_mode<synchronous>, transform_indices = @transform_1, window_bounds = array<i64: 1, 32>}, {pipeline_mode = #tpu.pipeline_mode<synchronous>, transform_indices = @transform_2, window_bounds = array<i64: 1, 32>}, {pipeline_mode = #tpu.pipeline_mode<synchronous>, transform_indices = @transform_3, window_bounds = array<i64: 32, 96>}, {pipeline_mode = #tpu.pipeline_mode<synchronous>, transform_indices = @transform_4, window_bounds = array<i64: 1, 96>}, {transform_indices = @transform_5, window_bounds = array<i64: 1, 4, 8, 8>}, {transform_indices = @transform_6, window_bounds = array<i64: 1, 4, 8, 8>}, {transform_indices = @transform_7, window_bounds = array<i64: 1, 4, 8, 8>}]} {
    %c0 = arith.constant 0 : index
    %c0_0 = arith.constant 0 : index
    %c0_1 = arith.constant 0 : index
    %0 = vector.load %arg2[%c0, %c0_0, %c0_1] : memref<1x8x32xf32, #tpu.memory_space<vmem>>, vector<1x8x32xf32>
    %1 = vector.shape_cast %0 : vector<1x8x32xf32> to vector<8x32xf32>
    %c0_2 = arith.constant 0 : index
    %c0_3 = arith.constant 0 : index
    %2 = vector.load %arg3[%c0_2, %c0_3] : memref<1x32xf32, #tpu.memory_space<vmem>>, vector<1x32xf32>
    %c0_4 = arith.constant 0 : index
    %c0_5 = arith.constant 0 : index
    %3 = vector.load %arg4[%c0_4, %c0_5] : memref<1x32xf32, #tpu.memory_space<vmem>>, vector<1x32xf32>
    %cst = arith.constant dense<0.000000e+00> : vector<8xf32>
    %4 = vector.multi_reduction <add>, %1, %cst [1] : vector<8x32xf32> to vector<8xf32>
    %5 = vector.shape_cast %4 : vector<8xf32> to vector<8x1xf32>
    %cst_6 = arith.constant 3.200000e+01 : f32
    %6 = vector.broadcast %cst_6 : f32 to vector<8x1xf32>
    %7 = arith.divf %5, %6 : vector<8x1xf32>
    %8 = vector.broadcast %7 : vector<8x1xf32> to vector<8x32xf32>
    %9 = arith.subf %1, %8 : vector<8x32xf32>
    %10 = arith.mulf %9, %9 : vector<8x32xf32>
    %cst_7 = arith.constant dense<0.000000e+00> : vector<8xf32>
    %11 = vector.multi_reduction <add>, %10, %cst_7 [1] : vector<8x32xf32> to vector<8xf32>
    %12 = vector.shape_cast %11 : vector<8xf32> to vector<8x1xf32>
    %cst_8 = arith.constant 3.100000e+01 : f32
    %13 = vector.broadcast %cst_8 : f32 to vector<8x1xf32>
    %14 = arith.divf %12, %13 : vector<8x1xf32>
    %15 = math.sqrt %14 : vector<8x1xf32>
    %16 = vector.broadcast %7 : vector<8x1xf32> to vector<8x32xf32>
    %17 = arith.subf %1, %16 : vector<8x32xf32>
    %18 = vector.broadcast %2 : vector<1x32xf32> to vector<8x32xf32>
    %19 = arith.mulf %18, %17 : vector<8x32xf32>
    %cst_9 = arith.constant 9.99999997E-7 : f32
    %20 = vector.broadcast %cst_9 : f32 to vector<8x1xf32>
    %21 = arith.addf %15, %20 : vector<8x1xf32>
    %22 = vector.broadcast %21 : vector<8x1xf32> to vector<8x32xf32>
    %23 = arith.divf %19, %22 : vector<8x32xf32>
    %24 = vector.broadcast %3 : vector<1x32xf32> to vector<8x32xf32>
    %25 = arith.addf %23, %24 : vector<8x32xf32>
    %26 = arith.truncf %25 : vector<8x32xf32> to vector<8x32xbf16>
    %c0_10 = arith.constant 0 : index
    %c0_11 = arith.constant 0 : index
    %27 = vector.load %arg5[%c0_10, %c0_11] : memref<32x96xbf16, #tpu.memory_space<vmem>>, vector<32x96xbf16>
    %cst_12 = arith.constant dense<0.000000e+00> : vector<8x96xf32>
    %28 = tpu.matmul %26, %27, %cst_12 {dimension_numbers = #tpu.dot_dimension_numbers<[1], [0], [0], [1], [0, 0, 1, 1], [], []>} : vector<8x32xbf16>, vector<32x96xbf16>, vector<8x96xf32> -> vector<8x96xf32>
    %c0_13 = arith.constant 0 : index
    %c0_14 = arith.constant 0 : index
    %29 = vector.load %arg6[%c0_13, %c0_14] : memref<1x96xf32, #tpu.memory_space<vmem>>, vector<1x96xf32>
    %30 = vector.broadcast %29 : vector<1x96xf32> to vector<8x96xf32>
    %31 = arith.addf %28, %30 : vector<8x96xf32>
    %32 = arith.truncf %31 : vector<8x96xf32> to vector<8x96xbf16>
    %33 = vector.extract_strided_slice %32 {offsets = [0, 0], sizes = [8, 8], strides = [1, 1]} : vector<8x96xbf16> to vector<8x8xbf16>
    %c0_15 = arith.constant 0 : index
    %c0_16 = arith.constant 0 : index
    %c0_17 = arith.constant 0 : index
    %c0_18 = arith.constant 0 : index
    %34 = vector.load %arg7[%c0_15, %c0_16, %c0_17, %c0_18] : memref<1x4x8x8xbf16, #tpu.memory_space<vmem>>, vector<1x1x8x8xbf16>
    %35 = vector.shape_cast %34 : vector<1x1x8x8xbf16> to vector<8x8xbf16>
    %36 = vector.shape_cast %33 : vector<8x8xbf16> to vector<1x1x8x8xbf16>
    tpu.vector_store %arg7[%c0_15, %c0_16, %c0_17, %c0_18], %36 {strides = array<i32>} : memref<1x4x8x8xbf16, #tpu.memory_space<vmem>>, vector<1x1x8x8xbf16>,
    %37 = vector.extract_strided_slice %32 {offsets = [0, 32], sizes = [8, 8], strides = [1, 1]} : vector<8x96xbf16> to vector<8x8xbf16>
    %c0_19 = arith.constant 0 : index
    %c0_20 = arith.constant 0 : index
    %c0_21 = arith.constant 0 : index
    %c0_22 = arith.constant 0 : index
    %38 = vector.load %arg8[%c0_19, %c0_20, %c0_21, %c0_22] : memref<1x4x8x8xbf16, #tpu.memory_space<vmem>>, vector<1x1x8x8xbf16>
    %39 = vector.shape_cast %38 : vector<1x1x8x8xbf16> to vector<8x8xbf16>
    %40 = vector.shape_cast %37 : vector<8x8xbf16> to vector<1x1x8x8xbf16>
    tpu.vector_store %arg8[%c0_19, %c0_20, %c0_21, %c0_22], %40 {strides = array<i32>} : memref<1x4x8x8xbf16, #tpu.memory_space<vmem>>, vector<1x1x8x8xbf16>,
    %41 = vector.extract_strided_slice %32 {offsets = [0, 64], sizes = [8, 8], strides = [1, 1]} : vector<8x96xbf16> to vector<8x8xbf16>
    %c0_23 = arith.constant 0 : index
    %c0_24 = arith.constant 0 : index
    %c0_25 = arith.constant 0 : index
    %c0_26 = arith.constant 0 : index
    %42 = vector.load %arg9[%c0_23, %c0_24, %c0_25, %c0_26] : memref<1x4x8x8xbf16, #tpu.memory_space<vmem>>, vector<1x1x8x8xbf16>
    %43 = vector.shape_cast %42 : vector<1x1x8x8xbf16> to vector<8x8xbf16>
    %44 = vector.shape_cast %41 : vector<8x8xbf16> to vector<1x1x8x8xbf16>
    tpu.vector_store %arg9[%c0_23, %c0_24, %c0_25, %c0_26], %44 {strides = array<i32>} : memref<1x4x8x8xbf16, #tpu.memory_space<vmem>>, vector<1x1x8x8xbf16>,
    %45 = vector.extract_strided_slice %32 {offsets = [0, 8], sizes = [8, 8], strides = [1, 1]} : vector<8x96xbf16> to vector<8x8xbf16>
    %c0_27 = arith.constant 0 : index
    %c1 = arith.constant 1 : index
    %c0_28 = arith.constant 0 : index
    %c0_29 = arith.constant 0 : index
    %46 = vector.load %arg7[%c0_27, %c1, %c0_28, %c0_29] : memref<1x4x8x8xbf16, #tpu.memory_space<vmem>>, vector<1x1x8x8xbf16>
    %47 = vector.shape_cast %46 : vector<1x1x8x8xbf16> to vector<8x8xbf16>
    %48 = vector.shape_cast %45 : vector<8x8xbf16> to vector<1x1x8x8xbf16>
    tpu.vector_store %arg7[%c0_27, %c1, %c0_28, %c0_29], %48 {strides = array<i32>} : memref<1x4x8x8xbf16, #tpu.memory_space<vmem>>, vector<1x1x8x8xbf16>,
    %49 = vector.extract_strided_slice %32 {offsets = [0, 40], sizes = [8, 8], strides = [1, 1]} : vector<8x96xbf16> to vector<8x8xbf16>
    %c0_30 = arith.constant 0 : index
    %c1_31 = arith.constant 1 : index
    %c0_32 = arith.constant 0 : index
    %c0_33 = arith.constant 0 : index
    %50 = vector.load %arg8[%c0_30, %c1_31, %c0_32, %c0_33] : memref<1x4x8x8xbf16, #tpu.memory_space<vmem>>, vector<1x1x8x8xbf16>
    %51 = vector.shape_cast %50 : vector<1x1x8x8xbf16> to vector<8x8xbf16>
    %52 = vector.shape_cast %49 : vector<8x8xbf16> to vector<1x1x8x8xbf16>
    tpu.vector_store %arg8[%c0_30, %c1_31, %c0_32, %c0_33], %52 {strides = array<i32>} : memref<1x4x8x8xbf16, #tpu.memory_space<vmem>>, vector<1x1x8x8xbf16>,
    %53 = vector.extract_strided_slice %32 {offsets = [0, 72], sizes = [8, 8], strides = [1, 1]} : vector<8x96xbf16> to vector<8x8xbf16>
    %c0_34 = arith.constant 0 : index
    %c1_35 = arith.constant 1 : index
    %c0_36 = arith.constant 0 : index
    %c0_37 = arith.constant 0 : index
    %54 = vector.load %arg9[%c0_34, %c1_35, %c0_36, %c0_37] : memref<1x4x8x8xbf16, #tpu.memory_space<vmem>>, vector<1x1x8x8xbf16>
    %55 = vector.shape_cast %54 : vector<1x1x8x8xbf16> to vector<8x8xbf16>
    %56 = vector.shape_cast %53 : vector<8x8xbf16> to vector<1x1x8x8xbf16>
    tpu.vector_store %arg9[%c0_34, %c1_35, %c0_36, %c0_37], %56 {strides = array<i32>} : memref<1x4x8x8xbf16, #tpu.memory_space<vmem>>, vector<1x1x8x8xbf16>,
    %57 = vector.extract_strided_slice %32 {offsets = [0, 16], sizes = [8, 8], strides = [1, 1]} : vector<8x96xbf16> to vector<8x8xbf16>
    %c0_38 = arith.constant 0 : index
    %c2 = arith.constant 2 : index
    %c0_39 = arith.constant 0 : index
    %c0_40 = arith.constant 0 : index
    %58 = vector.load %arg7[%c0_38, %c2, %c0_39, %c0_40] : memref<1x4x8x8xbf16, #tpu.memory_space<vmem>>, vector<1x1x8x8xbf16>
    %59 = vector.shape_cast %58 : vector<1x1x8x8xbf16> to vector<8x8xbf16>
    %60 = vector.shape_cast %57 : vector<8x8xbf16> to vector<1x1x8x8xbf16>
    tpu.vector_store %arg7[%c0_38, %c2, %c0_39, %c0_40], %60 {strides = array<i32>} : memref<1x4x8x8xbf16, #tpu.memory_space<vmem>>, vector<1x1x8x8xbf16>,
    %61 = vector.extract_strided_slice %32 {offsets = [0, 48], sizes = [8, 8], strides = [1, 1]} : vector<8x96xbf16> to vector<8x8xbf16>
    %c0_41 = arith.constant 0 : index
    %c2_42 = arith.constant 2 : index
    %c0_43 = arith.constant 0 : index
    %c0_44 = arith.constant 0 : index
    %62 = vector.load %arg8[%c0_41, %c2_42, %c0_43, %c0_44] : memref<1x4x8x8xbf16, #tpu.memory_space<vmem>>, vector<1x1x8x8xbf16>
    %63 = vector.shape_cast %62 : vector<1x1x8x8xbf16> to vector<8x8xbf16>
    %64 = vector.shape_cast %61 : vector<8x8xbf16> to vector<1x1x8x8xbf16>
    tpu.vector_store %arg8[%c0_41, %c2_42, %c0_43, %c0_44], %64 {strides = array<i32>} : memref<1x4x8x8xbf16, #tpu.memory_space<vmem>>, vector<1x1x8x8xbf16>,
    %65 = vector.extract_strided_slice %32 {offsets = [0, 80], sizes = [8, 8], strides = [1, 1]} : vector<8x96xbf16> to vector<8x8xbf16>
    %c0_45 = arith.constant 0 : index
    %c2_46 = arith.constant 2 : index
    %c0_47 = arith.constant 0 : index
    %c0_48 = arith.constant 0 : index
    %66 = vector.load %arg9[%c0_45, %c2_46, %c0_47, %c0_48] : memref<1x4x8x8xbf16, #tpu.memory_space<vmem>>, vector<1x1x8x8xbf16>
    %67 = vector.shape_cast %66 : vector<1x1x8x8xbf16> to vector<8x8xbf16>
    %68 = vector.shape_cast %65 : vector<8x8xbf16> to vector<1x1x8x8xbf16>
    tpu.vector_store %arg9[%c0_45, %c2_46, %c0_47, %c0_48], %68 {strides = array<i32>} : memref<1x4x8x8xbf16, #tpu.memory_space<vmem>>, vector<1x1x8x8xbf16>,
    %69 = vector.extract_strided_slice %32 {offsets = [0, 24], sizes = [8, 8], strides = [1, 1]} : vector<8x96xbf16> to vector<8x8xbf16>
    %c0_49 = arith.constant 0 : index
    %c3 = arith.constant 3 : index
    %c0_50 = arith.constant 0 : index
    %c0_51 = arith.constant 0 : index
    %70 = vector.load %arg7[%c0_49, %c3, %c0_50, %c0_51] : memref<1x4x8x8xbf16, #tpu.memory_space<vmem>>, vector<1x1x8x8xbf16>
    %71 = vector.shape_cast %70 : vector<1x1x8x8xbf16> to vector<8x8xbf16>
    %72 = vector.shape_cast %69 : vector<8x8xbf16> to vector<1x1x8x8xbf16>
    tpu.vector_store %arg7[%c0_49, %c3, %c0_50, %c0_51], %72 {strides = array<i32>} : memref<1x4x8x8xbf16, #tpu.memory_space<vmem>>, vector<1x1x8x8xbf16>,
    %73 = vector.extract_strided_slice %32 {offsets = [0, 56], sizes = [8, 8], strides = [1, 1]} : vector<8x96xbf16> to vector<8x8xbf16>
    %c0_52 = arith.constant 0 : index
    %c3_53 = arith.constant 3 : index
    %c0_54 = arith.constant 0 : index
    %c0_55 = arith.constant 0 : index
    %74 = vector.load %arg8[%c0_52, %c3_53, %c0_54, %c0_55] : memref<1x4x8x8xbf16, #tpu.memory_space<vmem>>, vector<1x1x8x8xbf16>
    %75 = vector.shape_cast %74 : vector<1x1x8x8xbf16> to vector<8x8xbf16>
    %76 = vector.shape_cast %73 : vector<8x8xbf16> to vector<1x1x8x8xbf16>
    tpu.vector_store %arg8[%c0_52, %c3_53, %c0_54, %c0_55], %76 {strides = array<i32>} : memref<1x4x8x8xbf16, #tpu.memory_space<vmem>>, vector<1x1x8x8xbf16>,
    %77 = vector.extract_strided_slice %32 {offsets = [0, 88], sizes = [8, 8], strides = [1, 1]} : vector<8x96xbf16> to vector<8x8xbf16>
    %c0_56 = arith.constant 0 : index
    %c3_57 = arith.constant 3 : index
    %c0_58 = arith.constant 0 : index
    %c0_59 = arith.constant 0 : index
    %78 = vector.load %arg9[%c0_56, %c3_57, %c0_58, %c0_59] : memref<1x4x8x8xbf16, #tpu.memory_space<vmem>>, vector<1x1x8x8xbf16>
    %79 = vector.shape_cast %78 : vector<1x1x8x8xbf16> to vector<8x8xbf16>
    %80 = vector.shape_cast %77 : vector<8x8xbf16> to vector<1x1x8x8xbf16>
    tpu.vector_store %arg9[%c0_56, %c3_57, %c0_58, %c0_59], %80 {strides = array<i32>} : memref<1x4x8x8xbf16, #tpu.memory_space<vmem>>, vector<1x1x8x8xbf16>,
    return
  }
  func.func @transform_0(%arg0: i32, %arg1: i32) -> (i32, i32, i32) {
    %c0_i32 = arith.constant 0 : i32
    %c0_i32_0 = arith.constant 0 : i32
    return %arg0, %arg1, %c0_i32 : i32, i32, i32
  }
  func.func @transform_1(%arg0: i32, %arg1: i32) -> (i32, i32) {
    %c0_i32 = arith.constant 0 : i32
    %c0_i32_0 = arith.constant 0 : i32
    %c0_i32_1 = arith.constant 0 : i32
    return %c0_i32, %c0_i32_0 : i32, i32
  }
  func.func @transform_2(%arg0: i32, %arg1: i32) -> (i32, i32) {
    %c0_i32 = arith.constant 0 : i32
    %c0_i32_0 = arith.constant 0 : i32
    %c0_i32_1 = arith.constant 0 : i32
    return %c0_i32, %c0_i32_0 : i32, i32
  }
  func.func @transform_3(%arg0: i32, %arg1: i32) -> (i32, i32) {
    %c0_i32 = arith.constant 0 : i32
    %c0_i32_0 = arith.constant 0 : i32
    %c0_i32_1 = arith.constant 0 : i32
    return %c0_i32, %c0_i32_0 : i32, i32
  }
  func.func @transform_4(%arg0: i32, %arg1: i32) -> (i32, i32) {
    %c0_i32 = arith.constant 0 : i32
    %c0_i32_0 = arith.constant 0 : i32
    %c0_i32_1 = arith.constant 0 : i32
    return %c0_i32, %c0_i32_0 : i32, i32
  }
  func.func @transform_5(%arg0: i32, %arg1: i32) -> (i32, i32, i32, i32) {
    %c0_i32 = arith.constant 0 : i32
    %c0_i32_0 = arith.constant 0 : i32
    %c0_i32_1 = arith.constant 0 : i32
    return %arg0, %c0_i32, %arg1, %c0_i32_0 : i32, i32, i32, i32
  }
  func.func @transform_6(%arg0: i32, %arg1: i32) -> (i32, i32, i32, i32) {
    %c0_i32 = arith.constant 0 : i32
    %c0_i32_0 = arith.constant 0 : i32
    %c0_i32_1 = arith.constant 0 : i32
    return %arg0, %c0_i32, %arg1, %c0_i32_0 : i32, i32, i32, i32
  }
  func.func @transform_7(%arg0: i32, %arg1: i32) -> (i32, i32, i32, i32) {
    %c0_i32 = arith.constant 0 : i32
    %c0_i32_0 = arith.constant 0 : i32
    %c0_i32_1 = arith.constant 0 : i32
    return %arg0, %c0_i32, %arg1, %c0_i32_0 : i32, i32, i32, i32
  }
}

</mosaic_0001>

<bundles_post_ra>
// kernel: tpu_custom_call.1
= control target key start
LH: loop header
LB: loop body
LE: loop exit
PB: predicated region body
PF: predicated region fallthrough
CT: control target
= control target key end

     0   :  { %s1496_s0 = inlined_call_operand.hbm [shape: f32[2,8,32], index: 0, kind: input, shape index: {}]   ;;  %s1497_s1 = inlined_call_operand.vmem [shape: f32[1,32], index: 1, kind: input, shape index: {}]   ;;  %s1498_s2 = inlined_call_operand.vmem [shape: f32[1,32], index: 2, kind: input, shape index: {}]   ;;  %s1499_s3 = inlined_call_operand.hbm [shape: bf16[32,96], index: 3, kind: input, shape index: {}]   ;;  %s1500_s4 = inlined_call_operand.vmem [shape: f32[1,96], index: 4, kind: input, shape index: {}]   ;;  %s1501_s5 = inlined_call_operand.hbm [shape: bf16[2,4,8,8], index: 5, kind: output, shape index: {0}]   ;;  %s1502_s6 = inlined_call_operand.hbm [shape: bf16[2,4,8,8], index: 6, kind: output, shape index: {1}]   ;;  %s1503_s7 = inlined_call_operand.hbm [shape: bf16[2,4,8,8], index: 7, kind: output, shape index: {2}]  }
   0x1   :  { %1509 = sst [smem:[#allocation16_spill]] %s1499_s3 }
   0x2   :  { %13 = vsyncpa [#allocation3], 0 }
   0x3   :  { %15 = vsyncpa [#allocation3 + $0x1], 0 }
   0x4   :  { %16 = vsyncpa [#allocation6], 0 }
   0x5   :  { %17 = vsyncpa [#allocation4], 0 }
   0x6   :  { %19 = vsyncpa [#allocation4 + $0x1], 0 }
   0x7   :  { %20 = vsyncpa [#allocation9], 0 }
   0x8   :  { %22 = vsyncpa [#allocation9 + $0x1], 0  ;;  %s1160_s24 = smov 0   ;;  %s1162_s25 = smov 0  }
   0x9   :  { %s1164_s26 = smov 0   ;;  %s1166_s27 = smov 0  }
   0xa   :  { %s1168_s28 = smov 0   ;;  %s1170_s29 = smov 0  }
   0xb LB: > { %s1191_s30 = sadd.s32 4294967295, %s1097_s29   ;;  %s1507_s8 = sadd.s32 4294967294, %s1097_s29   ;;  %s1097_s29 = sphi %s1170_s29, %s28_s29   ;;  %s1093_s28 = sphi %s1168_s28, %s1533_s28   ;;  %s1089_s27 = sphi %s1166_s27, %s1532_s27   ;;  %s1085_s26 = sphi %s1164_s26, %s1531_s26   ;;  %s1081_s25 = sphi %s1162_s25, %s1530_s25   ;;  %s1077_s24 = sphi %s1160_s24, %s1529_s24  }
   0xc   : > { %p62_p0 = scmp.ne.s32.totalorder %s1081_s25, %s1077_s24  ;;  %p1504_p1 = scmp.eq.s32.totalorder %s1191_s30, 0 }
   0xd   : > { %p178_p3 = scmp.eq.s32.totalorder %s1507_s8, 1  ;;  %p735_p5 = scmp.ge.s32.totalorder %s1097_s29, 1 }
   0xe   : > { %p1202_p4 = por %p1504_p1, %p62_p0  ;;  %p241_p7 = scmp.lt.s32.totalorder %s1097_s29, 3 }
   0xf   : > { %p1207_p6 = por %p178_p3, %p62_p0  ;;  %s1099_s12 = smov [#allocation5]  }
  0x10   : > { %s1510_s9 = scalar_select %p1202_p4, 1, 0 }
  0x11   : > { %s1511_s10 = scalar_select %p1207_p6, 1, 0 }
  0x12   : > { %p1212_p8 = pnand %p735_p5, %p241_p7  ;;  %s259_s13 = sshll.u32 %s1099_s12, 4  ;;  %s260_s13 = int_to_ptr.vmem [resolvable:$true] %s259_s13 }
  0x13   : > { %s40_s15 = sadd.s32 1, %s1093_s28  ;;  %s1514_s3 = sld [smem:[#allocation16_spill]] }
  0x14   : > { %s1512_s11 = scalar_select %p1212_p8, 1, 0 }
  0x15   : > { %p800_p9 = pneg %p1212_p8 }
  0x17   : > { %p1221_p11 = pnand %p800_p9, %p1504_p1 }
  0x19   : > { %s893_s18 = scalar_lea.hbm %s1514_s3, 256  ;;  %p895_p13 = pneg %p1221_p11 }
  0x1a   : > { %p894_p12 = scmp.ne.s32.totalorder %s1514_s3, %s893_s18  ;;  %p900_p5 = scmp.lt.u32.totalorder %s893_s18, %s1514_s3 }
  0x1c   : > { %p896_p0 = pnand %p895_p13, %p894_p12 }
  0x1e   : > { %p897_p3 = pneg %p896_p0 }
  0x20   : > { %p902_p7 = pnand %p900_p5, %p897_p3 }
  0x22   : > { %905 = shalt.err (!%p902_p7)
}
  0x23   : > { %s906_s23 = scalar_lea.vmem %s260_s13, 256  ;;  %p914_p2 = scmp.lt.s32.totalorder %s260_s13, %s260_s13 }
  0x24   : > { %p907_p9 = scmp.ne.s32.totalorder %s260_s13, %s906_s23  ;;  %p915_p6 = scmp.lt.s32.totalorder %s906_s23, %s906_s23 }
  0x26   : > { %p909_p10 = pnand %p907_p9, %p895_p13  ;;  %p916_p4 = por %p915_p6, %p914_p2 }
  0x28   : > { %p910_p1 = pneg %p909_p10 }
  0x2a   : > { %p917_p8 = pnand %p916_p4, %p910_p1 }
  0x2c   : > { %920 = shalt.err (!%p917_p8)
}
  0x2d   : > { %s1100_s12 = smov 64   ;;  %s1101_s16 = smov 4  }
  0x2e   : > { %803 = dma.hbm_to_vmem [thread:$0]  (!%p1221_p11), %s1514_s3, 256, %s260_s13, [#allocation6], %s1100_s12, %s1100_s12, %s1101_s16  }
  0x2f   : > { %p42_p1 = scmp.ge.s32.totalorder %s40_s15, 2  ;;  %s49_s19 = sadd.s32 1, %s1085_s26 }
  0x30   : > { %p56_p2 = scmp.ne.s32.totalorder %s1085_s26, %s1081_s25  ;;  %p57_p4 = scmp.eq.s32.totalorder %s1097_s29, 0 }
  0x31   : > { %s1535_s15 = smov (%p42_p1, %s40_s15), 0  ;;  %p1517_p8 = scmp.eq.s32.totalorder %s1191_s30, 1 }
  0x32   : > { %1515 = sst [smem:[#allocation15_spill]] %s1535_s15  ;;  %p1248_p6 = por %p57_p4, %p56_p2 }
  0x33   : > { %p1254_p10 = por %p1517_p8, %p56_p2  ;;  %s44_s14 = ssub.s32 %s1093_s28, %s1535_s15 }
  0x34   : > { %p819_p12 = scmp.lt.s32.totalorder %s1097_s29, 2  ;;  %p47_p11 = scmp.eq.s32.totalorder %s44_s14, 0 }
  0x35   : > { %s276_s13 = sand.u32 1, %s1085_s26   ;;  %s739_s12 = sshll.u32 %s1093_s28, 7 }
  0x36   : > { %s738_s22 = sshll.u32 %s276_s13, 3  ;;  %s1269_s18 = scalar_lea.hbm %s1496_s0, %s739_s12 }
  0x37   : > { %s1263_s23 = scalar_select %p47_p11, %s1085_s26, %s49_s19  }
  0x38   : > { %s280_s8 = scalar_lea.vmem [#allocation2], %s738_s22  ;;  %p1275_p13 = pnand %p819_p12, %p1248_p6 }
  0x39   : > { %s288_s3 = sshll.u32 %s280_s8, 4  ;;  %s277_s19 = scalar_lea.sflag [#allocation3], %s276_s13  ;;  %s1271_s3 = int_to_ptr.vmem [resolvable:$true] %s288_s3 }
  0x3a   : > { %s921_s15 = scalar_lea.hbm %s1269_s18, 128  ;;  %p923_p3 = pneg %p1275_p13 }
  0x3b   : > { %p922_p0 = scmp.ne.s32.totalorder %s1269_s18, %s921_s15  ;;  %s926_s12 = scalar_lea.hbm %s1496_s0, 256 }
  0x3c   : > { %p927_p9 = scmp.lt.u32.totalorder %s1269_s18, %s1496_s0  ;;  %p928_p1 = scmp.lt.u32.totalorder %s926_s12, %s921_s15 }
  0x3d   : > { %p924_p5 = pnand %p923_p3, %p922_p0  ;;  %p930_p4 = scmp.lt.u32.totalorder %s921_s15, %s1269_s18 }
  0x3e   : > { %p929_p2 = por %p928_p1, %p927_p9 }
  0x3f   : > { %p925_p7 = pneg %p924_p5 }
  0x40   : > { %p931_p6 = por %p930_p4, %p929_p2 }
  0x42   : > { %p932_p8 = pnand %p931_p6, %p925_p7 }
  0x44   : > { %935 = shalt.err (!%p932_p8)
}
  0x45   : > { %s936_s13 = scalar_lea.vmem %s1271_s3, 128  ;;  %s1102_s17 = smov [#allocation2]  }
  0x46   : > { %p937_p12 = scmp.ne.s32.totalorder %s1271_s3, %s936_s13  ;;  %s941_s22 = sshll.u32 %s1102_s17, 4  ;;  %s942_s22 = int_to_ptr.vmem [resolvable:$false] %s941_s22 }
  0x47   : > { %s943_s8 = scalar_lea.vmem %s942_s22, 256  ;;  %p944_p5 = scmp.lt.s32.totalorder %s1271_s3, %s942_s22 }
  0x48   : > { %p939_p11 = pnand %p937_p12, %p923_p3  ;;  %p945_p9 = scmp.lt.s32.totalorder %s943_s8, %s936_s13 }
  0x4a   : > { %p940_p0 = pneg %p939_p11  ;;  %p946_p1 = por %p945_p9, %p944_p5 }
  0x4c   : > { %p947_p2 = pnand %p946_p1, %p940_p0 }
  0x4e   : > { %950 = shalt.err (!%p947_p2)
}
  0x4f   : > { %807 = dma.hbm_to_vmem [thread:$0]  (!%p1275_p13), %s1269_s18, 128, %s1271_s3, %s277_s19  }
  0x50   : > { %p1520_p7 = scmp.ne.s32.totalorder %s1512_s11, 0 }
  0x51   : > { %s1307_s15 = sand.u32 (!%p1520_p7), 1, %s1081_s25   ;;  %p1521_p3 = scmp.ne.s32.totalorder (!%p1520_p7), %s1510_s9, 0 }
  0x52   : > { %297 = sbr.rel (%p1520_p7) target bundleno = 825 (0x339), region = 40  ;;  %s741_s12 = sshll.u32 (!%p1520_p7), %s1307_s15, 3 }
  0x53   : > { %s300_s20 = scalar_lea.sflag (!%p1520_p7), [#allocation3], %s1307_s15  ;;  %s303_s16 = scalar_lea.vmem (!%p1520_p7), [#allocation2], %s741_s12 }
  0x59   : > { %1060 = dma.done.wait (%p1521_p3), %s300_s20, 128  }
  0x5a   : > { %1062 = vsyncadd (%p1521_p3), %s300_s20, 4294967168  ;;  %p1522_p4 = scmp.eq.s32.totalorder %s1191_s30, 0 }
  0x5c   : > { %1064 = dma.done.wait (%p1522_p4), [#allocation6], 256   ;;  %p1523_p13 = pmov %p1522_p4 }
  0x5d   : > { %vm352_vm0 = vcmask 261120   ;;  %v349_v0 = vld [vmem:[%s303_s16] sm:$0xff]  ;;  %v887_v7 = vld [vmem:[#allocation5] sm:$0xff]   ;;  %v1103_v8 = vmov 0.0   ;;  %vm1104_vm1 = vmmov 0   ;;  %v888_v9 = vld [vmem:[#allocation5 + $0x8] sm:$0xff]  }
  0x5e   : > { %1066 = vsyncadd (%p1523_p13), [#allocation6], 4294967040  ;;  %v353_v1 = vsel %vm352_vm0, %v349_v0, 0.0  ;;  %780 = vmatprep.subr.bf16.mxu0 %v1103_v8  ;;  %784 = vmatprep.mubr.msk.bf16.mxu0 %vm1104_vm1, %v1103_v8  ;;  %v746_v18 = vld [vmem:[%s1497_s1] ss:$0 sm:$0xff]  ;;  %s1332_s13 = sshll.u32 %s1307_s15, 4 }
  0x5f   : > { %354 = vadd.xlane.f32.xlu0 %v353_v1  ;;  %781 = vmatpush3.bf16.msra.mxu0 %v887_v7  ;;  %v747_v21 = vld [vmem:[%s1498_s2] ss:$0 sm:$0xff]  ;;  %vm457_vm4 = vcmask 60416   ;;  %s1105_s17 = smov 80   ;;  %s1106_s22 = smov 96  }
  0x60   : > { %782 = vmatprep.subr.bf16.mxu0 %v1103_v8  ;;  %v748_v25 = vld [vmem:[%s1500_s4] ss:$0 sm:$0xff]  ;;  %s1335_s8 = scalar_lea.vmem [#allocation7], %s1332_s13  ;;  %s1107_s12 = smov 104  }
  0x61   : > { %s1108_s20 = smov 88   ;;  %s1109_s16 = smov 72  }
  0x62   : > { %s1110_s3 = smov 64   ;;  %s1111_s9 = smov 120  }
  0x63   : > { %783 = vmatpush3.bf16.msra.mxu0 %v888_v9  ;;  %s1112_s11 = smov 56   ;;  %s1113_s18 = smov 112  }
  0x64   : > { %s1114_s14 = smov 48   ;;  %s1115_s19 = smov 40  }
  0xec   : > { %v355_v2 = vpop.xlane.xlu0 %354 }
  0xed   : > { %v357_v3 = vmul.f32 0.03125, %v355_v2 }
  0xef   : > { %v358_v4 = vsub.f32 %v349_v0, %v357_v3 }
  0xf1   : > { %v359_v5 = vmul.f32 %v358_v4, %v358_v4  ;;  %v378_v19 = vmul.f32 %v746_v18, %v358_v4 }
  0xf3   : > { %v360_v6 = vsel %vm352_vm0, %v359_v5, 0.0 }
  0xf4   : > { %361 = vadd.xlane.f32.xlu0 %v360_v6 }
 0x181   : > { %v362_v10 = vpop.xlane.xlu0 %361 }
 0x182   : > { %v364_v11 = vmul.f32 0.032258064, %v362_v10 }
 0x184   : > { %889 = vrsqrt.f32 %v364_v11  ;;  %vm367_vm2 = vcmp.eq.f32.partialorder %v364_v11, inf  ;;  %v370_v14 = vand.u32 2147483648, %v364_v11  ;;  %vm369_vm3 = vcmp.eq.f32.partialorder %v364_v11, 0.0 }
 0x18e   : > { %v890_v12 = vpop.eup %889 }
 0x18f   : > { %v366_v13 = vmul.f32 %v890_v12, %v364_v11 }
 0x191   : > { %v368_v15 = vsel %vm367_vm2, %v364_v11, %v366_v13 }
 0x192   : > { %v371_v16 = vsel %vm369_vm3, %v370_v14, %v368_v15 }
 0x193   : > { %v379_v17 = vadd.f32 1e-06, %v371_v16 }
 0x195   : > { %891 = vrcp.f32 %v379_v17 }
 0x19f   : > { %v892_v20 = vpop.eup %891 }
 0x1a0   : > { %v381_v22 = vmul.f32 %v892_v20, %v378_v19 }
 0x1a2   : > { %v388_v23 = vadd.f32 %v747_v21, %v381_v22 }
 0x1a4   : > { %v389_v24 = vpack.c.bf16 %v388_v23, %v388_v23 }
 0x1a6   : > { %785 = vmatmul.mubr.msk.bf16.vlgmr.msra.gmra.mrb[0].mxu0 %vm352_vm0, %v389_v24 }
 0x279   : > { %v450_v26 = vpop.f32.mrb[0].mxu0 }
 0x27a   : > { %v451_v27 = vadd.f32 %v748_v25, %v450_v26  ;;  %v786_v28 = vpop.f32.mrb[1].mxu0 }
 0x27b   : > { %v453_v29 = vpop.f32.mrb[2].mxu0 }
 0x27c   : > { %v456_v30 = vpack.c.bf16 %v451_v27, %v451_v27  ;;  %v787_v31 = vpop.f32.mrb[3].mxu0 }
 0x27e   : > { %490 = vrot.lane.b32.xlu0 %v456_v30, %s1105_s17  ;;  %462 = vrot.lane.b32.xlu1 %v456_v30, %s1106_s22  ;;  %458 = vst.msk [vmem:[%s1335_s8] sm:$0xf] %vm457_vm4, %v456_v30  ;;  %s340_s17 = scalar_lea.vmem [#allocation8], %s1332_s13 }
 0x27f   : > { %s557_s22 = sshll.u32 %s340_s17, 4  ;;  %s1350_s22 = int_to_ptr.vmem [resolvable:$true] %s557_s22 }
 0x282   : > { %500 = vrot.lane.b32.xlu0 %v456_v30, %s1107_s12  ;;  %475 = vrot.lane.b32.xlu1 %v456_v30, %s1108_s20  ;;  %s520_s12 = sand.u32 1, %s1191_s30   ;;  %s1345_s20 = sshll.u32 %s1089_s27, 8 }
 0x283   : > { %s1359_s27 = scalar_lea.sflag [#allocation9], %s520_s12  ;;  %s951_s30 = scalar_lea.vmem %s1350_s22, 256 }
 0x284   : > { %p952_p6 = scmp.ne.s32.totalorder %s1350_s22, %s951_s30 }
 0x286   : > { %505 = vrot.lane.b32.xlu1 %v456_v30, %s1109_s16  ;;  %p953_p8 = pnand %p952_p6, %p1254_p10 }
 0x288   : > { %p954_p12 = pneg %p953_p8 }
 0x28a   : > { %466 = vrot.lane.b32.xlu1 %v456_v30, %s1110_s3 }
 0x28e   : > { %470 = vrot.lane.b32.xlu1 %v456_v30, %s1111_s9 }
 0x292   : > { %480 = vrot.lane.b32.xlu1 %v456_v30, %s1112_s11  ;;  %s1356_s11 = scalar_lea.hbm %s1502_s6, %s1345_s20 }
 0x296   : > { %485 = vrot.lane.b32.xlu1 %v456_v30, %s1113_s18  ;;  %s1116_s18 = smov [#allocation8]  }
 0x29a   : > { %495 = vrot.lane.b32.xlu1 %v456_v30, %s1114_s14  ;;  %s955_s14 = sshll.u32 %s1116_s18, 4  ;;  %s956_s14 = int_to_ptr.vmem [resolvable:$false] %s955_s14 }
 0x29b   : > { %p958_p11 = scmp.lt.s32.totalorder %s1350_s22, %s956_s14 }
 0x29e   : > { %510 = vrot.lane.b32.xlu1 %v456_v30, %s1115_s19  ;;  %s957_s19 = scalar_lea.vmem %s956_s14, 512 }
 0x29f   : > { %p959_p0 = scmp.lt.s32.totalorder %s957_s19, %s951_s30 }
 0x2a1   : > { %p960_p5 = por %p959_p0, %p958_p11 }
 0x2a3   : > { %p961_p9 = pnand %p960_p5, %p954_p12 }
 0x2f0   : > { %v491_v32 = vpop.permute.xlu0 %490  ;;  %v463_v33 = vpop.permute.xlu1 %462 }
 0x2f1   : > { %757 = vst.msk [vmem:[%s340_s17 + $0x8] sm:$0xf] %vm457_vm4, %v491_v32  ;;  %465 = vst.msk [vmem:[%s340_s17] sm:$0xf] %vm457_vm4, %v463_v33 }
 0x2f4   : > { %v501_v34 = vpop.permute.xlu0 %500  ;;  %v476_v35 = vpop.permute.xlu1 %475 }
 0x2f5   : > { %759 = vst.msk [vmem:[%s1335_s8 + $0xc] sm:$0xf] %vm457_vm4, %v501_v34  ;;  %754 = vst.msk [vmem:[%s340_s17 + $0x4] sm:$0xf] %vm457_vm4, %v476_v35 }
 0x2f8   : > { %v506_v36 = vpop.permute.xlu1 %505 }
 0x2f9   : > { %760 = vst.msk [vmem:[%s340_s17 + $0xc] sm:$0xf] %vm457_vm4, %v506_v36 }
 0x2fa   : > { %964 = shalt.err (!%p961_p9)
}
 0x2fb   : > { %s965_s17 = scalar_lea.hbm %s1356_s11, 256  ;;  %s969_s9 = scalar_lea.hbm %s1502_s6, 512 }
 0x2fc   : > { %p966_p1 = scmp.ne.s32.totalorder %s1356_s11, %s965_s17  ;;  %p970_p3 = scmp.lt.u32.totalorder %s1356_s11, %s1502_s6 }
 0x2fd   : > { %p971_p4 = scmp.lt.u32.totalorder %s969_s9, %s965_s17  ;;  %p973_p6 = scmp.lt.u32.totalorder %s965_s17, %s1356_s11 }
 0x2fe   : > { %p967_p2 = pnand %p966_p1, %p1254_p10 }
 0x2ff   : > { %p972_p13 = por %p971_p4, %p970_p3 }
 0x300   : > { %p968_p7 = pneg %p967_p2 }
 0x301   : > { %p974_p8 = por %p973_p6, %p972_p13 }
 0x303   : > { %p975_p12 = pnand %p974_p8, %p968_p7 }
 0x305   : > { %978 = shalt.err (!%p975_p12)
}
 0x306   : > { %s1117_s30 = smov 4   ;;  %v467_v37 = vpop.permute.xlu1 %466  ;;  %s1387_s19 = scalar_lea.vmem [#allocation10], %s1332_s13 }
 0x307   : > { %795 = dma.vmem_to_hbm [thread:$0]  (%p1254_p10), %s1350_s22, 256, %s1356_s11, %s1359_s27, %s1110_s3, %s1110_s3, %s1117_s30  }
 0x308   : > { %469 = vst.msk [vmem:[%s1387_s19] sm:$0xf] %vm457_vm4, %v467_v37  ;;  %s540_s17 = sshll.u32 %s1335_s8, 4  ;;  %s1402_s13 = scalar_lea.hbm %s1501_s5, %s1345_s20  ;;  %s1396_s17 = int_to_ptr.vmem [resolvable:$true] %s540_s17 }
 0x309   : > { %s979_s11 = scalar_lea.vmem %s1396_s17, 256  ;;  %s1118_s9 = smov [#allocation7]  }
 0x30a   : > { %v471_v38 = vpop.permute.xlu1 %470  ;;  %p980_p11 = scmp.ne.s32.totalorder %s1396_s17, %s979_s11  ;;  %s983_s18 = sshll.u32 %s1118_s9, 4  ;;  %s984_s18 = int_to_ptr.vmem [resolvable:$false] %s983_s18 }
 0x30b   : > { %753 = vst.msk [vmem:[%s1335_s8 + $0x4] sm:$0xf] %vm457_vm4, %v471_v38  ;;  %s985_s14 = scalar_lea.vmem %s984_s18, 512  ;;  %p986_p9 = scmp.lt.s32.totalorder %s1396_s17, %s984_s18 }
 0x30c   : > { %p981_p0 = pnand %p980_p11, %p1254_p10  ;;  %p987_p1 = scmp.lt.s32.totalorder %s985_s14, %s979_s11 }
 0x30e   : > { %v481_v39 = vpop.permute.xlu1 %480  ;;  %p982_p5 = pneg %p981_p0  ;;  %p988_p2 = por %p987_p1, %p986_p9 }
 0x30f   : > { %755 = vst.msk [vmem:[%s1387_s19 + $0x4] sm:$0xf] %vm457_vm4, %v481_v39 }
 0x310   : > { %p989_p7 = pnand %p988_p2, %p982_p5 }
 0x312   : > { %v486_v40 = vpop.permute.xlu1 %485 }
 0x313   : > { %756 = vst.msk [vmem:[%s1335_s8 + $0x8] sm:$0xf] %vm457_vm4, %v486_v40 }
 0x314   : > { %992 = shalt.err (!%p989_p7)
}
 0x315   : > { %s993_s8 = scalar_lea.hbm %s1402_s13, 256  ;;  %s997_s9 = scalar_lea.hbm %s1501_s5, 512 }
 0x316   : > { %p994_p3 = scmp.ne.s32.totalorder %s1402_s13, %s993_s8  ;;  %p998_p6 = scmp.lt.u32.totalorder %s1402_s13, %s1501_s5 }
 0x317   : > { %p999_p8 = scmp.lt.u32.totalorder %s997_s9, %s993_s8  ;;  %p1001_p11 = scmp.lt.u32.totalorder %s993_s8, %s1402_s13 }
 0x318   : > { %p995_p4 = pnand %p994_p3, %p1254_p10 }
 0x319   : > { %p1000_p12 = por %p999_p8, %p998_p6 }
 0x31a   : > { %p996_p13 = pneg %p995_p4 }
 0x31b   : > { %p1002_p0 = por %p1001_p11, %p1000_p12 }
 0x31d   : > { %p1003_p5 = pnand %p1002_p0, %p996_p13 }
 0x31f   : > { %1006 = shalt.err (!%p1003_p5)
}
 0x320   : > { %s1524_s11 = scalar_lea.sflag [#allocation4], %s1307_s15  ;;  %s574_s22 = sshll.u32 %s1387_s19, 4  ;;  %v496_v41 = vpop.permute.xlu1 %495  ;;  %s1436_s22 = int_to_ptr.vmem [resolvable:$true] %s574_s22 }
 0x321   : > { %794 = dma.vmem_to_hbm [thread:$0]  (%p1254_p10), %s1396_s17, 256, %s1402_s13, %s1524_s11, %s1110_s3, %s1110_s3, %s1117_s30  }
 0x322   : > { %758 = vst.msk [vmem:[%s1387_s19 + $0x8] sm:$0xf] %vm457_vm4, %v496_v41  ;;  %s1442_s15 = scalar_lea.hbm %s1503_s7, %s1345_s20  ;;  %s1007_s12 = scalar_lea.vmem %s1436_s22, 256 }
 0x323   : > { %p1008_p9 = scmp.ne.s32.totalorder %s1436_s22, %s1007_s12  ;;  %s1119_s17 = smov [#allocation10]  }
 0x324   : > { %v511_v42 = vpop.permute.xlu1 %510  ;;  %s1011_s13 = sshll.u32 %s1119_s17, 4  ;;  %s1012_s13 = int_to_ptr.vmem [resolvable:$false] %s1011_s13 }
 0x325   : > { %761 = vst.msk [vmem:[%s1387_s19 + $0xc] sm:$0xf] %vm457_vm4, %v511_v42  ;;  %p1009_p1 = pnand %p1008_p9, %p1254_p10  ;;  %s1013_s16 = scalar_lea.vmem %s1012_s13, 512 }
 0x326   : > { %p1014_p7 = scmp.lt.s32.totalorder %s1436_s22, %s1012_s13  ;;  %p1015_p3 = scmp.lt.s32.totalorder %s1013_s16, %s1007_s12 }
 0x327   : > { %p1010_p2 = pneg %p1009_p1 }
 0x328   : > { %p1016_p4 = por %p1015_p3, %p1014_p7 }
 0x32a   : > { %p1017_p13 = pnand %p1016_p4, %p1010_p2 }
 0x32c   : > { %1020 = shalt.err (!%p1017_p13)
}
 0x32d   : > { %s1021_s20 = scalar_lea.hbm %s1442_s15, 256  ;;  %s1025_s18 = scalar_lea.hbm %s1503_s7, 512 }
 0x32e   : > { %p1022_p6 = scmp.ne.s32.totalorder %s1442_s15, %s1021_s20  ;;  %p1026_p11 = scmp.lt.u32.totalorder %s1442_s15, %s1503_s7 }
 0x32f   : > { %p1027_p0 = scmp.lt.u32.totalorder %s1025_s18, %s1021_s20  ;;  %p1029_p9 = scmp.lt.u32.totalorder %s1021_s20, %s1442_s15 }
 0x330   : > { %p1023_p8 = pnand %p1022_p6, %p1254_p10 }
 0x331   : > { %p1028_p5 = por %p1027_p0, %p1026_p11 }
 0x332   : > { %p1024_p12 = pneg %p1023_p8 }
 0x333   : > { %p1030_p1 = por %p1029_p9, %p1028_p5 }
 0x335   : > { %p1031_p2 = pnand %p1030_p1, %p1024_p12 }
 0x337   : > { %1034 = shalt.err (!%p1031_p2)
}
 0x338   : > { %796 = dma.vmem_to_hbm [thread:$0]  (%p1254_p10), %s1436_s22, 256, %s1442_s15, %s1359_s27, %s1110_s3, %s1110_s3, %s1117_s30  }
 0x339 PF: > { %s589_s8 = sand.u32 1, %s1077_s24   ;;  %p1525_p7 = scmp.ne.s32.totalorder %s1511_s10, 0 }
 0x33a   : > { %p1526_p3 = scmp.ge.s32.totalorder %s1097_s29, 2  ;;  %s590_s12 = scalar_lea.sflag [#allocation4], %s589_s8 }
 0x33c   : > { %p809_p4 = pnand %p1526_p3, %p1525_p7 }
 0x33e   : > { %1068 = dma.done.wait (!%p809_p4), %s590_s12, 256  }
 0x33f   : > { %1070 = vsyncadd (!%p809_p4), %s590_s12, 4294967040  ;;  %s1527_s21 = sadd.s32 4294967294, %s1097_s29  }
 0x340   : > { %s598_s17 = sand.u32 1, %s1527_s21  }
 0x341   : > { %s599_s13 = scalar_lea.sflag [#allocation9], %s598_s17 }
 0x342   : > { %1072 = dma.done.wait (!%p809_p4), %s599_s13, 512  }
 0x343   : > { %1074 = vsyncadd (!%p809_p4), %s599_s13, 4294966784  ;;  %s28_s29 = sadd.s32 1, %s1097_s29   ;;  %s1528_s3 = sld [smem:[#allocation15_spill]] }
 0x344   : > { %p25_p10 = scmp.ge.s32.totalorder %s28_s29, 4   ;;  %s1529_s24 = smov %s1081_s25 }
 0x345   : > { %s1530_s25 = smov %s1085_s26  ;;  %s1531_s26 = smov %s1263_s23 }
 0x346   : > { %s1532_s27 = smov %s1093_s28  ;;  %27 = sbr.rel (!%p25_p10) target bundleno = 11 (0xb), region = 130 }
 0x349   : > { %s1533_s28 = smov %s1528_s3 }
 0x34d   :  { %613 = vsyncpa [#allocation3], 1 }
 0x34e   :  { %615 = vsyncpa [#allocation3 + $0x1], 1 }
 0x34f   :  { %616 = vsyncpa [#allocation6], 1 }
 0x350   :  { %617 = vsyncpa [#allocation4], 1 }
 0x351   :  { %619 = vsyncpa [#allocation4 + $0x1], 1 }
 0x352   :  { %620 = vsyncpa [#allocation9], 1 }
 0x353   :  { %622 = vsyncpa [#allocation9 + $0x1], 1 }

</bundles_post_ra>
